<compile_context>
chip_gen: v6e
topology: v6e:2x2x1
jax: 0.10.0
libtpu: 0.0.40
codegen_flags: <defaults>
</compile_context>

<pallas_src>
import functools

import jax
import jax.numpy as jnp
from jax.experimental import pallas as pl
from jax.experimental.pallas import tpu as pltpu


_OUT_LANES = 128                        # lane-dense per-sample-loss output width
_TARGET_BLOCK_BYTES = 8 * 1024 * 1024   # ~8 MiB/embedding block (x2 buffers fits all gens)
_VMEM_LIMIT_BYTES = 48 * 1024 * 1024    # > 16/32 MiB scoped defaults, < v7x 64 MiB physical


def _fc_ddp_loss_kernel(x_ref, label_ref, out_ref, sumexp_ref, tgt_ref, *, scale, margin):
    """Grid = (batch tiles, class tiles). Streaming softmax-CE over class tiles."""
    k = pl.program_id(1)  # class-tile index (innermost, "arbitrary")

    @pl.when(k == 0)
    def _init():
        sumexp_ref[...] = jnp.zeros_like(sumexp_ref)
        tgt_ref[...] = jnp.zeros_like(tgt_ref)

    x = x_ref[...].astype(jnp.float32)   # (TB, TC); bf16 inputs are upcast here
    lbl = label_ref[...]                 # (TB, 1) int32
    tb, tc = x.shape

    # scaled sigmoid "cosine" scores for this class tile; values in (0, scale]
    s = scale * jax.nn.sigmoid(x)

    # boolean target mask (global class index); reused for margin + target select
    col = jax.lax.broadcasted_iota(jnp.int32, (tb, tc), 1) + k * tc
    is_tgt = col == lbl

    # cosface: subtract margin on the target column only, already scaled
    logits = jnp.where(is_tgt, s - scale * margin, s)

    # streaming accumulation; no max-shift needed since logits <= scale (=8) so
    # exp(logits) <= e^scale stays comfortably finite in f32.
    sumexp_ref[...] += jnp.sum(jnp.exp(logits), axis=-1, keepdims=True)
    tgt_ref[...] += jnp.sum(jnp.where(is_tgt, logits, 0.0), axis=-1, keepdims=True)

    @pl.when(k == pl.num_programs(1) - 1)
    def _finalize():
        per_sample = jnp.log(sumexp_ref[...]) - tgt_ref[...]        # (TB, 1)
        out_ref[...] = jnp.broadcast_to(per_sample, (tb, _OUT_LANES)).astype(out_ref.dtype)


def _largest_divisor_tile(dim, unit, cap):
    """Largest multiple of `unit` that divides `dim` and is <= cap; `dim` if unaligned."""
    if dim % unit != 0:
        return dim
    best = unit
    for t in range(unit, min(dim, cap) + 1, unit):
        if dim % t == 0:
            best = t
    return best


def fc_ddp_loss(embeddings, label, *, scale=8.0, margin=0.2,
                batch_tile=None, class_tile=None):
    """Scalar mean cross-entropy loss, matching FC_ddp.forward (cosface, no CIFP)."""
    B, C = embeddings.shape
    itemsize = jnp.dtype(embeddings.dtype).itemsize

    # ---- tile selection: biggest divisor tiles within a v7x-safe VMEM budget ----
    if class_tile is None:
        class_tile = _largest_divisor_tile(C, 128, min(C, 8192))
    if batch_tile is None:
        rows_cap = max(8, _TARGET_BLOCK_BYTES // (class_tile * itemsize))
        batch_tile = _largest_divisor_tile(B, 8, rows_cap)

    assert B % batch_tile == 0 and C % class_tile == 0, "tiles must divide (B, C)"
    assert batch_tile % 8 == 0 or batch_tile == B
    assert class_tile % 128 == 0 or class_tile == C

    label2d = label.reshape(B, 1).astype(jnp.int32)
    grid = (B // batch_tile, C // class_tile)

    kernel = functools.partial(_fc_ddp_loss_kernel, scale=scale, margin=margin)

    per_sample = pl.pallas_call(
        kernel,
        out_shape=jax.ShapeDtypeStruct((B, _OUT_LANES), jnp.float32),
        grid_spec=pltpu.PrefetchScalarGridSpec(
            num_scalar_prefetch=0,
            grid=grid,
            in_specs=[
                # embeddings: (TB, TC) tile, double-buffered over both grid axes
                pl.BlockSpec((batch_tile, class_tile), lambda i, k: (i, k)),
                # labels: tiny (TB, 1) int32 block, constant over k -> DMA'd once per i.
                # (SMEM scalar-prefetch would need per-row scalar loads to rebuild the
                #  label vector, so the tiny VMEM block is the cheaper option here.)
                pl.BlockSpec((batch_tile, 1), lambda i, k: (i, 0)),
            ],
            # lane-dense per-sample-loss block, revisited across k, written at k == last
            out_specs=pl.BlockSpec((batch_tile, _OUT_LANES), lambda i, k: (i, 0)),
            scratch_shapes=[
                pltpu.VMEM((batch_tile, 1), jnp.float32),   # running sum(exp(logits))
                pltpu.VMEM((batch_tile, 1), jnp.float32),   # running target logit
            ],
        ),
        compiler_params=pltpu.CompilerParams(
            # batch axis parallel (2x on v7x's two TensorCores); class axis is the
            # streaming reduction -> arbitrary.
            dimension_semantics=("parallel", "arbitrary"),
            vmem_limit_bytes=_VMEM_LIMIT_BYTES,
        ),
    )(embeddings, label2d)

    # CrossEntropyLoss(reduction='mean'); lane 0 carries each sample's loss.
    return jnp.mean(per_sample[:, 0])


def _reference_loss(embeddings, label, scale=8.0, margin=0.2):
    """Pure-JAX reference of the PyTorch forward."""
    cos_theta = jax.nn.sigmoid(embeddings.astype(jnp.float32))
    onehot = jax.nn.one_hot(label, embeddings.shape[-1], dtype=jnp.float32)
    out = (cos_theta - margin * onehot) * scale
    logp = jax.nn.log_softmax(out, axis=-1)
    return jnp.mean(-jnp.sum(logp * onehot, axis=-1))


if __name__ == "__main__":
    # Case 1: small f32 problem (single-tile grid), tight tolerance.
    B, C = 8, 512
    key = jax.random.PRNGKey(0)
    k_emb, k_lbl = jax.random.split(key)
    embeddings = jax.random.normal(k_emb, (B, C), dtype=jnp.float32)
    label = jax.random.randint(k_lbl, (B,), 0, C, dtype=jnp.int32)

    loss = jax.block_until_ready(fc_ddp_loss(embeddings, label, scale=8.0, margin=0.2))
    ref = _reference_loss(embeddings, label, scale=8.0, margin=0.2)
    assert jnp.allclose(loss, ref, atol=1e-5, rtol=1e-5), (loss, ref)

    # Case 2: bf16 embeddings, multi-tile grid (4 batch x 4 class tiles) exercising the
    # pipelined streaming-CE path.
    B2, C2 = 64, 1024
    emb2 = jax.random.normal(jax.random.PRNGKey(1), (B2, C2), dtype=jnp.bfloat16)
    lbl2 = jax.random.randint(jax.random.PRNGKey(2), (B2,), 0, C2, dtype=jnp.int32)
    loss2 = jax.block_until_ready(
        fc_ddp_loss(emb2, lbl2, scale=8.0, margin=0.2, batch_tile=16, class_tile=256))
    ref2 = _reference_loss(emb2, lbl2, scale=8.0, margin=0.2)
    assert jnp.allclose(loss2, ref2, atol=5e-3, rtol=5e-3), (loss2, ref2)

    print("KERNEL_OK")
</pallas_src>

<mosaic_0001>
module attributes {stable_mosaic.version = 11 : i64} {
  func.func @_fc_ddp_loss_kernel(%arg0: i32, %arg1: i32, %arg2: memref<8x512xf32, #tpu.memory_space<vmem>>, %arg3: memref<8x1xi32, #tpu.memory_space<vmem>>, %arg4: memref<8x128xf32, #tpu.memory_space<vmem>>, %arg5: memref<8x1xf32, #tpu.memory_space<vmem>>, %arg6: memref<8x1xf32, #tpu.memory_space<vmem>>) attributes {dimension_semantics = [#tpu.dimension_semantics<parallel>, #tpu.dimension_semantics<arbitrary>], iteration_bounds = array<i64: 1, 1>, scalar_prefetch = 0 : i64, scratch_operands = 2 : i64, tpu.core_type = #tpu.core_type<tc>, window_params = [{transform_indices = @transform_0, window_bounds = array<i64: 8, 512>}, {transform_indices = @transform_1, window_bounds = array<i64: 8, 1>}, {transform_indices = @transform_2, window_bounds = array<i64: 8, 128>}]} {
    %c0_i32 = arith.constant 0 : i32
    %0 = arith.cmpi eq, %arg1, %c0_i32 : i32
    %1 = arith.extui %0 : i1 to i32
    %c0_i32_0 = arith.constant 0 : i32
    %2 = arith.cmpi ne, %1, %c0_i32_0 : i32
    scf.if %2 {
      %cst_19 = arith.constant 0.000000e+00 : f32
      %37 = vector.broadcast %cst_19 : f32 to vector<8x1xf32>
      %c0_20 = arith.constant 0 : index
      %c0_21 = arith.constant 0 : index
      %38 = vector.load %arg5[%c0_20, %c0_21] : memref<8x1xf32, #tpu.memory_space<vmem>>, vector<8x1xf32>
      tpu.vector_store %arg5[%c0_20, %c0_21], %37 {strides = array<i32>} : memref<8x1xf32, #tpu.memory_space<vmem>>, vector<8x1xf32>,
      %cst_22 = arith.constant 0.000000e+00 : f32
      %39 = vector.broadcast %cst_22 : f32 to vector<8x1xf32>
      %c0_23 = arith.constant 0 : index
      %c0_24 = arith.constant 0 : index
      %40 = vector.load %arg6[%c0_23, %c0_24] : memref<8x1xf32, #tpu.memory_space<vmem>>, vector<8x1xf32>
      tpu.vector_store %arg6[%c0_23, %c0_24], %39 {strides = array<i32>} : memref<8x1xf32, #tpu.memory_space<vmem>>, vector<8x1xf32>,
    } else {
    }
    %c0 = arith.constant 0 : index
    %c0_1 = arith.constant 0 : index
    %3 = vector.load %arg2[%c0, %c0_1] : memref<8x512xf32, #tpu.memory_space<vmem>>, vector<8x512xf32>
    %c0_2 = arith.constant 0 : index
    %c0_3 = arith.constant 0 : index
    %4 = vector.load %arg3[%c0_2, %c0_3] : memref<8x1xi32, #tpu.memory_space<vmem>>, vector<8x1xi32>
    %5 = arith.negf %3 : vector<8x512xf32>
    %6 = math.exp %5 : vector<8x512xf32>
    %cst = arith.constant 1.000000e+00 : f32
    %7 = vector.broadcast %cst : f32 to vector<8x512xf32>
    %8 = arith.addf %7, %6 : vector<8x512xf32>
    %9 = arith.divf %7, %8 : vector<8x512xf32>
    %cst_4 = arith.constant 8.000000e+00 : f32
    %10 = vector.broadcast %cst_4 : f32 to vector<8x512xf32>
    %11 = arith.mulf %10, %9 : vector<8x512xf32>
    %12 = tpu.iota {dimensions = array<i32: 1>} : vector<8x512xi32>
    %c512_i32 = arith.constant 512 : i32
    %13 = arith.muli %arg1, %c512_i32 : i32
    %14 = vector.broadcast %13 : i32 to vector<8x512xi32>
    %15 = arith.addi %12, %14 : vector<8x512xi32>
    %16 = vector.broadcast %4 : vector<8x1xi32> to vector<8x512xi32>
    %17 = arith.cmpi eq, %15, %16 : vector<8x512xi32>
    %cst_5 = arith.constant 1.600000e+00 : f32
    %18 = vector.broadcast %cst_5 : f32 to vector<8x512xf32>
    %19 = arith.subf %11, %18 : vector<8x512xf32>
    %20 = arith.select %17, %19, %11 : vector<8x512xi1>, vector<8x512xf32>
    %c0_6 = arith.constant 0 : index
    %c0_7 = arith.constant 0 : index
    %21 = vector.load %arg5[%c0_6, %c0_7] : memref<8x1xf32, #tpu.memory_space<vmem>>, vector<8x1xf32>
    %22 = math.exp %20 : vector<8x512xf32>
    %cst_8 = arith.constant dense<0.000000e+00> : vector<8xf32>
    %23 = vector.multi_reduction <add>, %22, %cst_8 [1] : vector<8x512xf32> to vector<8xf32>
    %24 = vector.shape_cast %23 : vector<8xf32> to vector<8x1xf32>
    %25 = arith.addf %21, %24 : vector<8x1xf32>
    %c0_9 = arith.constant 0 : index
    %c0_10 = arith.constant 0 : index
    %26 = vector.load %arg5[%c0_9, %c0_10] : memref<8x1xf32, #tpu.memory_space<vmem>>, vector<8x1xf32>
    tpu.vector_store %arg5[%c0_9, %c0_10], %25 {strides = array<i32>} : memref<8x1xf32, #tpu.memory_space<vmem>>, vector<8x1xf32>,
    %c0_11 = arith.constant 0 : index
    %c0_12 = arith.constant 0 : index
    %27 = vector.load %arg6[%c0_11, %c0_12] : memref<8x1xf32, #tpu.memory_space<vmem>>, vector<8x1xf32>
    %cst_13 = arith.constant 0.000000e+00 : f32
    %28 = vector.broadcast %cst_13 : f32 to vector<8x512xf32>
    %29 = arith.select %17, %20, %28 : vector<8x512xi1>, vector<8x512xf32>
    %cst_14 = arith.constant dense<0.000000e+00> : vector<8xf32>
    %30 = vector.multi_reduction <add>, %29, %cst_14 [1] : vector<8x512xf32> to vector<8xf32>
    %31 = vector.shape_cast %30 : vector<8xf32> to vector<8x1xf32>
    %32 = arith.addf %27, %31 : vector<8x1xf32>
    %c0_15 = arith.constant 0 : index
    %c0_16 = arith.constant 0 : index
    %33 = vector.load %arg6[%c0_15, %c0_16] : memref<8x1xf32, #tpu.memory_space<vmem>>, vector<8x1xf32>
    tpu.vector_store %arg6[%c0_15, %c0_16], %32 {strides = array<i32>} : memref<8x1xf32, #tpu.memory_space<vmem>>, vector<8x1xf32>,
    %c0_i32_17 = arith.constant 0 : i32
    %34 = arith.cmpi eq, %arg1, %c0_i32_17 : i32
    %35 = arith.extui %34 : i1 to i32
    %c0_i32_18 = arith.constant 0 : i32
    %36 = arith.cmpi ne, %35, %c0_i32_18 : i32
    scf.if %36 {
      %c0_19 = arith.constant 0 : index
      %c0_20 = arith.constant 0 : index
      %37 = vector.load %arg5[%c0_19, %c0_20] : memref<8x1xf32, #tpu.memory_space<vmem>>, vector<8x1xf32>
      %38 = math.log %37 : vector<8x1xf32>
      %c0_21 = arith.constant 0 : index
      %c0_22 = arith.constant 0 : index
      %39 = vector.load %arg6[%c0_21, %c0_22] : memref<8x1xf32, #tpu.memory_space<vmem>>, vector<8x1xf32>
      %40 = arith.subf %38, %39 : vector<8x1xf32>
      %41 = vector.shape_cast %40 : vector<8x1xf32> to vector<8x1xf32>
      %42 = vector.broadcast %41 : vector<8x1xf32> to vector<8x128xf32>
      %c0_23 = arith.constant 0 : index
      %c0_24 = arith.constant 0 : index
      %43 = vector.load %arg4[%c0_23, %c0_24] : memref<8x128xf32, #tpu.memory_space<vmem>>, vector<8x128xf32>
      tpu.vector_store %arg4[%c0_23, %c0_24], %42 {strides = array<i32>} : memref<8x128xf32, #tpu.memory_space<vmem>>, vector<8x128xf32>,
    } else {
    }
    return
  }
  func.func @transform_0(%arg0: i32, %arg1: i32) -> (i32, i32) {
    %c0_i32 = arith.constant 0 : i32
    return %arg0, %arg1 : i32, i32
  }
  func.func @transform_1(%arg0: i32, %arg1: i32) -> (i32, i32) {
    %c0_i32 = arith.constant 0 : i32
    %c0_i32_0 = arith.constant 0 : i32
    return %arg0, %c0_i32 : i32, i32
  }
  func.func @transform_2(%arg0: i32, %arg1: i32) -> (i32, i32) {
    %c0_i32 = arith.constant 0 : i32
    %c0_i32_0 = arith.constant 0 : i32
    return %arg0, %c0_i32 : i32, i32
  }
}

</mosaic_0001>

<bundles_post_ra>
// kernel: tpu_custom_call.1
= control target key start
LH: loop header
LB: loop body
LE: loop exit
PB: predicated region body
PF: predicated region fallthrough
CT: control target
= control target key end

     0   :  { %7 = vsyncpa [#allocation5], 0  ;;  %s264_s0 = inlined_call_operand.hbm [shape: f32[8,512], index: 0, kind: input, shape index: {}]   ;;  %s265_s1 = inlined_call_operand.vmem [shape: s32[8,1], index: 1, kind: input, shape index: {}]   ;;  %s266_s2 = inlined_call_operand.hbm [shape: f32[8,128], index: 2, kind: output, shape index: {}]  }
   0x1   :  { %8 = vsyncpa [#allocation6], 0  ;;  %s232_s9 = smov [#allocation4]  }
   0x2   :  { %s15_s10 = sshll.u32 %s232_s9, 4  ;;  %s16_s10 = int_to_ptr.vmem [resolvable:$true] %s15_s10 }
   0x3   :  { %s196_s11 = scalar_lea.vmem %s16_s10, 512  ;;  %p201_p1 = scmp.lt.s32.totalorder %s16_s10, %s16_s10 }
   0x4   :  { %p197_p0 = scmp.ne.s32.totalorder %s16_s10, %s196_s11  ;;  %p202_p2 = scmp.lt.s32.totalorder %s196_s11, %s196_s11 }
   0x6   :  { %p203_p3 = por %p202_p2, %p201_p1 }
   0x8   :  { %p204_p4 = pnand %p203_p3, %p197_p0 }
   0xa   :  { %207 = shalt.err (!%p204_p4)
}
   0xb   :  { %18 = dma.hbm_to_vmem [thread:$0]  %s264_s0, 512, %s16_s10, [#allocation5]  }
   0xc   :  { %228 = dma.done.wait [#allocation5], 512  }
   0xd   :  { %229 = vsyncadd [#allocation5], 4294966784  ;;  %v233_v0 = vmov 0   ;;  %v35_v1 = vld [vmem:[%s265_s1] sm:$0xff]  ;;  %vm28_vm0 = vcmask 7168   ;;  %v234_v2 = vmov 0.0   ;;  %v64_v19 = vlaneseq }
   0xe   :  { %160 = vset.pattern.permute.xlu0 %v233_v0  ;;  %161 = vset.pattern.permute.xlu1 %v233_v0  ;;  %30 = vst.msk [vmem:[#allocation3] sm:$0xff] %vm28_vm0, %v234_v2  ;;  %29 = vst.msk [vmem:[#allocation2] sm:$0xff] %vm28_vm0, %v234_v2  ;;  %v31_v3 = vld [vmem:[#allocation4] sm:$0xff]  ;;  %v32_v4 = vld [vmem:[#allocation4 + $0x8] sm:$0xff]  ;;  %s235_s0 = smov [#allocation7]  }
   0xf   :  { %76 = vperm.xlu0 %160, %v35_v1   ;;  %v33_v5 = vld [vmem:[#allocation4 + $0x10] sm:$0xff]  ;;  %v148_v6 = vmul.f32 -1.442695, %v31_v3  ;;  %v34_v7 = vld [vmem:[#allocation4 + $0x18] sm:$0xff]  ;;  %v149_v8 = vmul.f32 -1.442695, %v32_v4 }
  0x10   :  { %v150_v9 = vmul.f32 -1.442695, %v33_v5  ;;  %v151_v10 = vmul.f32 -1.442695, %v34_v7  ;;  %v65_v23 = vand.u32 127, %v64_v19  ;;  %s139_s1 = sshll.u32 %s235_s0, 4  ;;  %s140_s1 = int_to_ptr.vmem [resolvable:$true] %s139_s1 }
  0x11   :  { %162 = vpow2.f32 %v148_v6  ;;  %s208_s16 = scalar_lea.vmem %s140_s1, 128  ;;  %p213_p6 = scmp.lt.s32.totalorder %s140_s1, %s140_s1 }
  0x12   :  { %164 = vpow2.f32 %v149_v8  ;;  %v66_v28 = vadd.s32 128, %v65_v23  ;;  %v67_v30 = vadd.s32 256, %v65_v23  ;;  %v68_v31 = vadd.s32 384, %v65_v23  ;;  %p209_p5 = scmp.ne.s32.totalorder %s140_s1, %s208_s16  ;;  %p214_p7 = scmp.lt.s32.totalorder %s208_s16, %s208_s16 }
  0x13   :  { %166 = vpow2.f32 %v150_v9 }
  0x14   :  { %168 = vpow2.f32 %v151_v10  ;;  %p215_p8 = por %p214_p7, %p213_p6 }
  0x15   :  { %v107_v59 = vld [vmem:[#allocation3] sm:$0xff]  ;;  %v90_v62 = vld [vmem:[#allocation2] sm:$0xff] }
  0x16   :  { %p216_p9 = pnand %p215_p8, %p209_p5 }
  0x1e   :  { %v163_v11 = vpop.eup %162 }
  0x1f   :  { %v165_v12 = vpop.eup %164  ;;  %v48_v14 = vadd.f32 1.0, %v163_v11 }
  0x20   :  { %v167_v13 = vpop.eup %166  ;;  %v49_v16 = vadd.f32 1.0, %v165_v12 }
  0x21   :  { %v169_v15 = vpop.eup %168  ;;  %v50_v17 = vadd.f32 1.0, %v167_v13  ;;  %170 = vrcp.f32 %v48_v14 }
  0x22   :  { %v51_v18 = vadd.f32 1.0, %v169_v15  ;;  %172 = vrcp.f32 %v49_v16 }
  0x23   :  { %174 = vrcp.f32 %v50_v17 }
  0x24   :  { %176 = vrcp.f32 %v51_v18 }
  0x2e   :  { %v171_v20 = vpop.eup %170 }
  0x2f   :  { %v173_v21 = vpop.eup %172  ;;  %v60_v25 = vmul.f32 8.0, %v171_v20 }
  0x30   :  { %v175_v22 = vpop.eup %174  ;;  %v61_v26 = vmul.f32 8.0, %v173_v21 }
  0x31   :  { %v177_v24 = vpop.eup %176  ;;  %v62_v27 = vmul.f32 8.0, %v175_v22  ;;  %v152_v32 = vadd.f32 -1.6, %v60_v25 }
  0x32   :  { %v63_v29 = vmul.f32 8.0, %v177_v24  ;;  %v153_v33 = vadd.f32 -1.6, %v61_v26 }
  0x33   :  { %v154_v34 = vadd.f32 -1.6, %v62_v27 }
  0x34   :  { %v155_v36 = vadd.f32 -1.6, %v63_v29 }
  0x8a   :  { %v77_v35 = vpop.permute.xlu0 %76 }
  0x8b   :  { %vm78_vm1 = vcmp.eq.s32.totalorder %v65_v23, %v77_v35  ;;  %vm79_vm2 = vcmp.eq.s32.totalorder %v66_v28, %v77_v35  ;;  %vm80_vm3 = vcmp.eq.s32.totalorder %v67_v30, %v77_v35  ;;  %vm81_vm4 = vcmp.eq.s32.totalorder %v68_v31, %v77_v35 }
  0x8c   :  { %v87_v37 = vsel %vm79_vm2, %v153_v33, %v61_v26  ;;  %v108_v38 = vsel %vm78_vm1, %v152_v32, 0.0  ;;  %v88_v39 = vsel %vm80_vm3, %v154_v34, %v62_v27  ;;  %v86_v41 = vsel %vm78_vm1, %v152_v32, %v60_v25 }
  0x8d   :  { %v93_v40 = vmul.f32 1.442695, %v87_v37  ;;  %v109_v42 = vsel %vm79_vm2, %v153_v33, 0.0  ;;  %v91_v43 = vmul.f32 1.442695, %v86_v41  ;;  %v89_v44 = vsel %vm81_vm4, %v155_v36, %v63_v29 }
  0x8e   :  { %v112_v45 = vadd.f32 %v109_v42, %v108_v38  ;;  %v95_v46 = vmul.f32 1.442695, %v88_v39  ;;  %v110_v47 = vsel %vm80_vm3, %v154_v34, 0.0  ;;  %v97_v49 = vmul.f32 1.442695, %v89_v44 }
  0x8f   :  { %178 = vpow2.f32 %v93_v40  ;;  %v111_v50 = vsel %vm81_vm4, %v155_v36, 0.0 }
  0x90   :  { %v113_v48 = vadd.f32 %v112_v45, %v110_v47  ;;  %180 = vpow2.f32 %v91_v43 }
  0x91   :  { %182 = vpow2.f32 %v95_v46 }
  0x92   :  { %v114_v51 = vadd.f32 %v113_v48, %v111_v50  ;;  %184 = vpow2.f32 %v97_v49 }
  0x94   :  { %115 = vadd.xlane.f32.xlu1 %v114_v51 }
  0x9c   :  { %v179_v52 = vpop.eup %178 }
  0x9d   :  { %v181_v53 = vpop.eup %180 }
  0x9e   :  { %v99_v54 = vadd.f32 %v181_v53, %v179_v52  ;;  %v183_v55 = vpop.eup %182 }
  0x9f   :  { %v185_v57 = vpop.eup %184 }
  0xa0   :  { %v100_v56 = vadd.f32 %v183_v55, %v99_v54 }
  0xa2   :  { %v101_v58 = vadd.f32 %v185_v57, %v100_v56 }
  0xa4   :  { %102 = vadd.xlane.f32.xlu0 %v101_v58 }
 0x11d   :  { %v116_v60 = vpop.xlane.xlu1 %115 }
 0x11e   :  { %v117_v61 = vadd.f32 %v116_v60, %v107_v59 }
 0x120   :  { %118 = vst.msk [vmem:[#allocation3] sm:$0xff] %vm28_vm0, %v117_v61 }
 0x127   :  { %v125_v4 = vld [vmem:[#allocation3] sm:$0xff] }
 0x12d   :  { %v103_v63 = vpop.xlane.xlu0 %102 }
 0x12e   :  { %v104_v0 = vadd.f32 %v103_v63, %v90_v62 }
 0x130   :  { %106 = vst.msk [vmem:[#allocation2] sm:$0xff] %vm28_vm0, %v104_v0 }
 0x137   :  { %v122_v1 = vld [vmem:[#allocation2] sm:$0xff] }
 0x138   :  { %186 = vlog2.f32 %v122_v1 }
 0x145   :  { %v187_v2 = vpop.eup %186 }
 0x146   :  { %v124_v3 = vmul.f32 0.6931472, %v187_v2 }
 0x148   :  { %v126_v5 = vsub.f32 %v124_v3, %v125_v4 }
 0x14a   :  { %129 = vperm.xlu1 %161, %v126_v5  }
 0x1c5   :  { %v130_v6 = vpop.permute.xlu1 %129 }
 0x1c6   :  { %132 = vst [vmem:[#allocation7] sm:$0xff] %v130_v6 }
 0x1c7   :  { %219 = shalt.err (!%p216_p9)
}
 0x1c8   :  { %142 = dma.vmem_to_hbm [thread:$0]  %s140_s1, 128, %s266_s2, [#allocation6]  }
 0x1c9   :  { %230 = dma.done.wait [#allocation6], 128  }
 0x1ca   :  { %231 = vsyncadd [#allocation6], 4294967168 }
 0x1cb   :  { %146 = vsyncpa [#allocation5], 1 }
 0x1cc   :  { %147 = vsyncpa [#allocation6], 1 }

</bundles_post_ra>
